<compile_context>
chip_gen: v5e
topology: v5e:2x2
jax: 0.10.0
libtpu: 0.0.40
codegen_flags: <defaults>
</compile_context>

<pallas_src>
import functools

import jax
import jax.numpy as jnp
from jax import lax
from jax.experimental import pallas as pl
from jax.experimental.pallas import tpu as pltpu


# ----------------------------- Pallas kernels ------------------------------ #

def _chan_pos_partials_kernel(x_ref, pmax_ref, psum_ref):
    """Per-(channel, position) partials over slices.

    x block:    (S, CBLK, HWp)
    pmax block: (CBLK, HWp) = max over S
    psum block: (CBLK, HWp) = sum over S
    Only the leading (non-lane, non-sublane) axis is reduced -> pure VPU work;
    the cheap cross-lane reductions happen once in XLA on these small partials.
    """
    xb = x_ref[...].astype(jnp.float32)
    pmax_ref[...] = jnp.max(xb, axis=0)
    psum_ref[...] = jnp.sum(xb, axis=0)


def _slice_stats_kernel(x_ref, attchw_ref, smax_ref, ssum_ref):
    """Lane-dense per-slice partials of x2 = x * att_c * att_hw.

    x block:      (S, CBLK, HWp)
    attchw block: (CBLK, HWp)
    smax / ssum:  (1, S, HWp) resident accumulators (one per parallel-axis index).
    Only the sublane (CBLK) axis is reduced here; HW stays on the lanes so the
    XLU never does an in-loop cross-lane reduction and the stores stay unmasked.
    """
    j = pl.program_id(1)

    @pl.when(j == 0)
    def _():
        smax_ref[...] = jnp.full(smax_ref.shape, -jnp.inf, smax_ref.dtype)
        ssum_ref[...] = jnp.zeros(ssum_ref.shape, ssum_ref.dtype)

    x2 = x_ref[...].astype(jnp.float32) * attchw_ref[...][None, :, :]   # (S,CBLK,HWp)
    smax_ref[...] = jnp.maximum(smax_ref[...], jnp.max(x2, axis=1)[None, :, :])
    ssum_ref[...] = ssum_ref[...] + jnp.sum(x2, axis=1)[None, :, :]


def _apply_kernel(x_ref, attchw_ref, atts_ref, out_ref):
    """out = x * att_c[c] * att_hw[hw] * att_s[s]   (all scales pre-combined)."""
    xb = x_ref[...].astype(jnp.float32)
    scaled = xb * attchw_ref[...][None, :, :]                            # (S,CBLK,HWp)
    out_ref[...] = (scaled * atts_ref[...][:, :, None]).astype(out_ref.dtype)


# ------------------------------- helpers ----------------------------------- #

def _mlp(v, layer1, layer2):
    (w1, b1), (w2, b2) = layer1, layer2
    return jnp.maximum(v @ w1 + b1, 0.0) @ w2 + b2


def _vmem_budget():
    """(per-block byte budget, scoped-vmem limit) -- generation aware."""
    vmem_cap = 64 << 20                                    # conservative default (v7x)
    try:
        info = pltpu.get_tpu_info()
        vmem_cap = int(getattr(info, "vmem_capacity_bytes", vmem_cap))
    except Exception:
        pass
    if vmem_cap >= (100 << 20):                            # v5e / v6e: 128 MiB VMEM
        return 8 << 20, 64 << 20
    return 4 << 20, 48 << 20                               # v7x: 64 MiB, keep headroom


def _compiler_params(semantics, vmem_limit):
    return pltpu.CompilerParams(dimension_semantics=semantics,
                                vmem_limit_bytes=vmem_limit)


def _pick_cblk(S, C, HWp, dtype, block_budget_bytes):
    """Channel block size.

    Prefers the largest divisor of C that is a multiple of the dtype's sublane
    tile (8 f32 / 16 bf16 / 32 int8), fits the per-block VMEM budget, and leaves
    >= 4 grid steps (double-buffering per core + even megacore split on v7x).
    Falls back to the largest plain divisor of C (never a single full-C block
    blowing VMEM).
    TODO(synk): if even an (S, 1, HWp) block exceeds the budget (huge S*H*W),
    the HW axis would also need tiling; not required at realistic CSAM shapes.
    """
    itemsize = jnp.dtype(dtype).itemsize
    sub = max(8, 32 // itemsize)                            # sublane packing tile
    cap = max(1, block_budget_bytes // max(1, S * HWp * itemsize))
    cap = min(C, cap)
    if C >= 4 * sub:
        cap = min(cap, C // 4)
    # largest divisor of C that is a multiple of `sub` and <= cap
    start = cap - (cap % sub)
    for d in range(start, sub - 1, -sub):
        if d > 0 and C % d == 0:
            return d
    # fallback: largest divisor of C <= cap (may be sublane-padded but legal)
    for d in range(min(cap, C), 0, -1):
        if C % d == 0:
            return d
    return 1


def init_params(key, num_slices, num_channels, reduction=16, rate=4, rank=5):
    ks = jax.random.split(key, 9)

    def lin(k, fin, fout):
        kw, kb = jax.random.split(k)
        return (jax.random.normal(kw, (fin, fout), jnp.float32) * 0.1,
                jax.random.normal(kb, (fout,), jnp.float32) * 0.1)

    s, c = num_slices, num_channels
    return {
        "sem1": lin(ks[0], c, c // reduction),
        "sem2": lin(ks[1], c // reduction, c),
        "conv_w": jax.random.normal(ks[2], (1, 2, 7, 7), jnp.float32) * 0.1,
        "conv_b": jax.random.normal(ks[3], (1,), jnp.float32) * 0.1,
        "sl1": lin(ks[4], s, s * rate),
        "sl2": lin(ks[5], s * rate, s),
        "mean": lin(ks[6], s, s),
        "log_diag": lin(ks[7], s, s),
        "factor": lin(ks[8], s, s * rank),
    }


# ------------------------------ forward pass -------------------------------- #

@functools.partial(jax.jit, static_argnames=("rank",))
def csam_forward(x, params, sample_key, rank=5):
    f32 = jnp.float32
    S, C, H, W = x.shape
    HW = H * W
    HWp = ((HW + 127) // 128) * 128            # lane-dense: pad HW to 128 multiple
    itemsize = x.dtype.itemsize

    x3 = x.reshape(S, C, HW)                   # HW -> lanes, C -> sublanes
    if HWp != HW:
        x3 = jnp.pad(x3, ((0, 0), (0, 0), (0, HWp - HW)))

    block_budget, vmem_limit = _vmem_budget()
    cblk = _pick_cblk(S, C, HWp, x3.dtype, block_budget)
    n_cblk = C // cblk if C % cblk == 0 else pl.cdiv(C, cblk)
    # (cblk always divides C by construction)
    n_cblk = C // cblk
    n_par = 2 if (n_cblk % 2 == 0 and n_cblk >= 2) else 1   # megacore split for P2
    kpp = n_cblk // n_par

    xbytes = S * C * HWp * itemsize

    # ---- Pass 1: per-(c, hw) partials over slices (one read of x) ----------
    pmax, psum = pl.pallas_call(
        _chan_pos_partials_kernel,
        grid=(n_cblk,),
        in_specs=[pl.BlockSpec((S, cblk, HWp), lambda j: (0, j, 0))],
        out_specs=(pl.BlockSpec((cblk, HWp), lambda j: (j, 0)),
                   pl.BlockSpec((cblk, HWp), lambda j: (j, 0))),
        out_shape=(jax.ShapeDtypeStruct((C, HWp), f32),
                   jax.ShapeDtypeStruct((C, HWp), f32)),
        compiler_params=_compiler_params(("parallel",), vmem_limit),
        cost_estimate=pl.CostEstimate(
            flops=2 * S * C * HWp, transcendentals=0,
            bytes_accessed=xbytes + 2 * C * HWp * 4),
    )(x3)

    pmax_r = pmax[:, :HW] if HWp != HW else pmax
    psum_r = psum[:, :HW] if HWp != HW else psum

    # ---- semantic (channel) attention: tiny MLP in XLA ----------------------
    ch_max = jnp.max(pmax_r, axis=1)[None, :]                        # (1, C)
    ch_mean = (jnp.sum(psum_r, axis=1) / float(S * HW))[None, :]     # (1, C)
    att_c = jax.nn.sigmoid(_mlp(ch_max, params["sem1"], params["sem2"])
                           + _mlp(ch_mean, params["sem1"], params["sem2"]))  # (1, C)

    # ---- positional attention: (H,W) stats of x1 = x*att_c from the partials
    #      (att_c > 0 so the max commutes), 7x7 conv + sigmoid in XLA ---------
    ac = att_c[0][:, None]                                           # (C, 1)
    pos_max = jnp.max(ac * pmax_r, axis=0)                           # (HW,)
    pos_mean = jnp.sum(ac * psum_r, axis=0) / float(S * C)           # (HW,)
    att_in = jnp.stack([pos_max, pos_mean]).reshape(1, 2, H, W)
    conv = lax.conv_general_dilated(att_in, params["conv_w"], (1, 1),
                                    [(3, 3), (3, 3)],
                                    dimension_numbers=("NCHW", "OIHW", "NCHW"))
    att_hw = jax.nn.sigmoid(conv[0, 0] + params["conv_b"][0]).reshape(HW)    # (HW,)
    if HWp != HW:
        att_hw = jnp.pad(att_hw, (0, HWp - HW))                      # zeros on pad lanes
    att_chw = (att_c[0][:, None] * att_hw[None, :]).astype(f32)      # (C, HWp)

    # ---- Pass 2: per-slice partials of x2 = x*att_c*att_hw (one read of x) --
    # Lane-dense (n_par, S, HWp) partial max/sum; cross-lane reduce done in XLA.
    smax_p, ssum_p = pl.pallas_call(
        _slice_stats_kernel,
        grid=(n_par, kpp),
        in_specs=[pl.BlockSpec((S, cblk, HWp), lambda p, j: (0, p * kpp + j, 0)),
                  pl.BlockSpec((cblk, HWp), lambda p, j: (p * kpp + j, 0))],
        out_specs=(pl.BlockSpec((1, S, HWp), lambda p, j: (p, 0, 0)),
                   pl.BlockSpec((1, S, HWp), lambda p, j: (p, 0, 0))),
        out_shape=(jax.ShapeDtypeStruct((n_par, S, HWp), f32),
                   jax.ShapeDtypeStruct((n_par, S, HWp), f32)),
        compiler_params=_compiler_params(("parallel", "arbitrary"), vmem_limit),
        cost_estimate=pl.CostEstimate(
            flops=3 * S * C * HWp, transcendentals=0,
            bytes_accessed=xbytes + C * HWp * 4 + 2 * n_par * S * HWp * 4),
    )(x3, att_chw)

    smax_c = jnp.max(smax_p, axis=0)                                 # (S, HWp)
    ssum_c = jnp.sum(ssum_p, axis=0)                                 # (S, HWp)
    if HWp != HW:
        smax_c, ssum_c = smax_c[:, :HW], ssum_c[:, :HW]
    s_max = jnp.max(smax_c, axis=1)[None, :]                         # (1, S)
    s_mean = (jnp.sum(ssum_c, axis=1) / float(C * HW))[None, :]      # (1, S)

    # ---- slice attention with LowRankMultivariateNormal sampling (XLA) ------
    att = (_mlp(s_max, params["sl1"], params["sl2"])
           + _mlp(s_mean, params["sl1"], params["sl2"]))             # (1, S)
    temp = jnp.maximum(att, 0.0)
    wm, bm = params["mean"]
    wd, bd = params["log_diag"]
    wf, bf = params["factor"]
    loc = temp @ wm + bm                                             # (1, S)
    diag = jnp.exp(temp @ wd + bd)                                   # (1, S)
    factor = (temp @ wf + bf).reshape(1, S, rank)                    # (1, S, R)
    k1, k2 = jax.random.split(sample_key)
    eps_w = jax.random.normal(k1, (1, rank), f32)
    eps_d = jax.random.normal(k2, (1, S), f32)
    # sample = loc + cov_factor @ eps_W + sqrt(cov_diag) * eps_D  (as torch .sample())
    sample = loc + jnp.einsum("bsr,br->bs", factor, eps_w) + jnp.sqrt(diag) * eps_d
    att_s = jax.nn.sigmoid(sample).reshape(S, 1).astype(f32)         # (S, 1)

    # ---- Pass 3: apply all three attentions (one read + one write of x) -----
    out3 = pl.pallas_call(
        _apply_kernel,
        grid=(n_cblk,),
        in_specs=[pl.BlockSpec((S, cblk, HWp), lambda j: (0, j, 0)),
                  pl.BlockSpec((cblk, HWp), lambda j: (j, 0)),
                  pl.BlockSpec((S, 1), lambda j: (0, 0))],
        out_specs=pl.BlockSpec((S, cblk, HWp), lambda j: (0, j, 0)),
        out_shape=jax.ShapeDtypeStruct((S, C, HWp), x.dtype),
        compiler_params=_compiler_params(("parallel",), vmem_limit),
        cost_estimate=pl.CostEstimate(
            flops=2 * S * C * HWp, transcendentals=0,
            bytes_accessed=2 * xbytes + C * HWp * 4 + S * 4),
    )(x3, att_chw, att_s)

    if HWp != HW:
        out3 = out3[:, :, :HW]
    return out3.reshape(S, C, H, W)


# ------------------------------ pure-JAX reference -------------------------- #

def csam_reference(x, params, sample_key, rank=5):
    """Pure-JAX reference (same math, same RNG) used to validate the kernels."""
    x = x.astype(jnp.float32)
    S, C, H, W = x.shape
    cmax = jnp.max(x, axis=(0, 2, 3))[None, :]
    cmean = jnp.mean(x, axis=(0, 2, 3))[None, :]
    att_c = jax.nn.sigmoid(_mlp(cmax, params["sem1"], params["sem2"])
                           + _mlp(cmean, params["sem1"], params["sem2"]))
    x1 = x * att_c[0][None, :, None, None]

    att_in = jnp.stack([jnp.max(x1, axis=(0, 1)), jnp.mean(x1, axis=(0, 1))])[None]
    conv = lax.conv_general_dilated(
        att_in, params["conv_w"], (1, 1), [(3, 3), (3, 3)],
        dimension_numbers=("NCHW", "OIHW", "NCHW"))
    att_hw = jax.nn.sigmoid(conv[0, 0] + params["conv_b"][0])
    x2 = x1 * att_hw[None, None, :, :]

    smax = jnp.max(x2, axis=(1, 2, 3))[None, :]
    smean = jnp.mean(x2, axis=(1, 2, 3))[None, :]
    att = (_mlp(smax, params["sl1"], params["sl2"])
           + _mlp(smean, params["sl1"], params["sl2"]))
    temp = jnp.maximum(att, 0.0)
    loc = temp @ params["mean"][0] + params["mean"][1]
    diag = jnp.exp(temp @ params["log_diag"][0] + params["log_diag"][1])
    factor = (temp @ params["factor"][0] + params["factor"][1]).reshape(1, S, rank)
    k1, k2 = jax.random.split(sample_key)
    eps_w = jax.random.normal(k1, (1, rank), jnp.float32)
    eps_d = jax.random.normal(k2, (1, S), jnp.float32)
    sample = loc + jnp.einsum("bsr,br->bs", factor, eps_w) + jnp.sqrt(diag) * eps_d
    att_s = jax.nn.sigmoid(sample)
    return x2 * att_s[0][:, None, None, None]


if __name__ == "__main__":
    S, C, H, W = 8, 32, 16, 16          # num_slices=8, num_channels=32
    key = jax.random.PRNGKey(0)
    kx, kp, ksamp = jax.random.split(key, 3)
    x = jax.random.normal(kx, (S, C, H, W), jnp.float32)
    params = init_params(kp, S, C)

    out = csam_forward(x, params, ksamp)
    out = jax.block_until_ready(out)
    assert out.shape == (S, C, H, W) and out.dtype == jnp.float32

    ref = csam_reference(x, params, ksamp)
    assert jnp.allclose(out, ref, atol=1e-3, rtol=1e-3), "mismatch vs reference"

    print("KERNEL_OK")
</pallas_src>

<mosaic_0001>
module attributes {stable_mosaic.version = 11 : i64} {
  func.func @_chan_pos_partials_kernel(%arg0: i32, %arg1: memref<8x8x256xf32, #tpu.memory_space<vmem>>, %arg2: memref<8x256xf32, #tpu.memory_space<vmem>>, %arg3: memref<8x256xf32, #tpu.memory_space<vmem>>) attributes {dimension_semantics = [#tpu.dimension_semantics<parallel>], iteration_bounds = array<i64: 4>, scalar_prefetch = 0 : i64, scratch_operands = 0 : i64, tpu.core_type = #tpu.core_type<tc>, window_params = [{transform_indices = @transform_0, window_bounds = array<i64: 8, 8, 256>}, {transform_indices = @transform_1, window_bounds = array<i64: 8, 256>}, {transform_indices = @transform_2, window_bounds = array<i64: 8, 256>}]} {
    %c0 = arith.constant 0 : index
    %c0_0 = arith.constant 0 : index
    %c0_1 = arith.constant 0 : index
    %0 = vector.load %arg1[%c0, %c0_0, %c0_1] : memref<8x8x256xf32, #tpu.memory_space<vmem>>, vector<8x8x256xf32>
    %cst = arith.constant dense<0xFF800000> : vector<8x256xf32>
    %1 = vector.multi_reduction <maximumf>, %0, %cst [0] : vector<8x8x256xf32> to vector<8x256xf32>
    %c0_2 = arith.constant 0 : index
    %c0_3 = arith.constant 0 : index
    %2 = vector.load %arg2[%c0_2, %c0_3] : memref<8x256xf32, #tpu.memory_space<vmem>>, vector<8x256xf32>
    tpu.vector_store %arg2[%c0_2, %c0_3], %1 {strides = array<i32>} : memref<8x256xf32, #tpu.memory_space<vmem>>, vector<8x256xf32>,
    %cst_4 = arith.constant dense<0.000000e+00> : vector<8x256xf32>
    %3 = vector.multi_reduction <add>, %0, %cst_4 [0] : vector<8x8x256xf32> to vector<8x256xf32>
    %c0_5 = arith.constant 0 : index
    %c0_6 = arith.constant 0 : index
    %4 = vector.load %arg3[%c0_5, %c0_6] : memref<8x256xf32, #tpu.memory_space<vmem>>, vector<8x256xf32>
    tpu.vector_store %arg3[%c0_5, %c0_6], %3 {strides = array<i32>} : memref<8x256xf32, #tpu.memory_space<vmem>>, vector<8x256xf32>,
    return
  }
  func.func @transform_0(%arg0: i32) -> (i32, i32, i32) {
    %c0_i32 = arith.constant 0 : i32
    %c0_i32_0 = arith.constant 0 : i32
    %c0_i32_1 = arith.constant 0 : i32
    return %c0_i32, %arg0, %c0_i32_0 : i32, i32, i32
  }
  func.func @transform_1(%arg0: i32) -> (i32, i32) {
    %c0_i32 = arith.constant 0 : i32
    %c0_i32_0 = arith.constant 0 : i32
    return %arg0, %c0_i32 : i32, i32
  }
  func.func @transform_2(%arg0: i32) -> (i32, i32) {
    %c0_i32 = arith.constant 0 : i32
    %c0_i32_0 = arith.constant 0 : i32
    return %arg0, %c0_i32 : i32, i32
  }
}

module attributes {stable_mosaic.version = 11 : i64} {
  func.func @_slice_stats_kernel(%arg0: i32, %arg1: i32, %arg2: memref<8x8x256xf32, #tpu.memory_space<vmem>>, %arg3: memref<8x256xf32, #tpu.memory_space<vmem>>, %arg4: memref<1x8x256xf32, #tpu.memory_space<vmem>>, %arg5: memref<1x8x256xf32, #tpu.memory_space<vmem>>) attributes {dimension_semantics = [#tpu.dimension_semantics<parallel>, #tpu.dimension_semantics<arbitrary>], iteration_bounds = array<i64: 2, 2>, scalar_prefetch = 0 : i64, scratch_operands = 0 : i64, tpu.core_type = #tpu.core_type<tc>, window_params = [{transform_indices = @transform_0, window_bounds = array<i64: 8, 8, 256>}, {transform_indices = @transform_1, window_bounds = array<i64: 8, 256>}, {transform_indices = @transform_2, window_bounds = array<i64: 1, 8, 256>}, {transform_indices = @transform_3, window_bounds = array<i64: 1, 8, 256>}]} {
    %c0_i32 = arith.constant 0 : i32
    %0 = arith.cmpi eq, %arg1, %c0_i32 : i32
    %1 = arith.extui %0 : i1 to i32
    %c0_i32_0 = arith.constant 0 : i32
    %2 = arith.cmpi ne, %1, %c0_i32_0 : i32
    scf.if %2 {
      %cst_18 = arith.constant 0xFF800000 : f32
      %18 = vector.broadcast %cst_18 : f32 to vector<1x8x256xf32>
      %c0_19 = arith.constant 0 : index
      %c0_20 = arith.constant 0 : index
      %c0_21 = arith.constant 0 : index
      %19 = vector.load %arg4[%c0_19, %c0_20, %c0_21] : memref<1x8x256xf32, #tpu.memory_space<vmem>>, vector<1x8x256xf32>
      tpu.vector_store %arg4[%c0_19, %c0_20, %c0_21], %18 {strides = array<i32>} : memref<1x8x256xf32, #tpu.memory_space<vmem>>, vector<1x8x256xf32>,
      %cst_22 = arith.constant 0.000000e+00 : f32
      %20 = vector.broadcast %cst_22 : f32 to vector<1x8x256xf32>
      %c0_23 = arith.constant 0 : index
      %c0_24 = arith.constant 0 : index
      %c0_25 = arith.constant 0 : index
      %21 = vector.load %arg5[%c0_23, %c0_24, %c0_25] : memref<1x8x256xf32, #tpu.memory_space<vmem>>, vector<1x8x256xf32>
      tpu.vector_store %arg5[%c0_23, %c0_24, %c0_25], %20 {strides = array<i32>} : memref<1x8x256xf32, #tpu.memory_space<vmem>>, vector<1x8x256xf32>,
    } else {
    }
    %c0 = arith.constant 0 : index
    %c0_1 = arith.constant 0 : index
    %c0_2 = arith.constant 0 : index
    %3 = vector.load %arg2[%c0, %c0_1, %c0_2] : memref<8x8x256xf32, #tpu.memory_space<vmem>>, vector<8x8x256xf32>
    %c0_3 = arith.constant 0 : index
    %c0_4 = arith.constant 0 : index
    %4 = vector.load %arg3[%c0_3, %c0_4] : memref<8x256xf32, #tpu.memory_space<vmem>>, vector<8x256xf32>
    %5 = vector.shape_cast %4 : vector<8x256xf32> to vector<1x8x256xf32>
    %6 = vector.broadcast %5 : vector<1x8x256xf32> to vector<8x8x256xf32>
    %7 = arith.mulf %3, %6 : vector<8x8x256xf32>
    %c0_5 = arith.constant 0 : index
    %c0_6 = arith.constant 0 : index
    %c0_7 = arith.constant 0 : index
    %8 = vector.load %arg4[%c0_5, %c0_6, %c0_7] : memref<1x8x256xf32, #tpu.memory_space<vmem>>, vector<1x8x256xf32>
    %cst = arith.constant dense<0xFF800000> : vector<8x256xf32>
    %9 = vector.multi_reduction <maximumf>, %7, %cst [1] : vector<8x8x256xf32> to vector<8x256xf32>
    %10 = vector.shape_cast %9 : vector<8x256xf32> to vector<1x8x256xf32>
    %11 = arith.maximumf %8, %10 : vector<1x8x256xf32>
    %c0_8 = arith.constant 0 : index
    %c0_9 = arith.constant 0 : index
    %c0_10 = arith.constant 0 : index
    %12 = vector.load %arg4[%c0_8, %c0_9, %c0_10] : memref<1x8x256xf32, #tpu.memory_space<vmem>>, vector<1x8x256xf32>
    tpu.vector_store %arg4[%c0_8, %c0_9, %c0_10], %11 {strides = array<i32>} : memref<1x8x256xf32, #tpu.memory_space<vmem>>, vector<1x8x256xf32>,
    %c0_11 = arith.constant 0 : index
    %c0_12 = arith.constant 0 : index
    %c0_13 = arith.constant 0 : index
    %13 = vector.load %arg5[%c0_11, %c0_12, %c0_13] : memref<1x8x256xf32, #tpu.memory_space<vmem>>, vector<1x8x256xf32>
    %cst_14 = arith.constant dense<0.000000e+00> : vector<8x256xf32>
    %14 = vector.multi_reduction <add>, %7, %cst_14 [1] : vector<8x8x256xf32> to vector<8x256xf32>
    %15 = vector.shape_cast %14 : vector<8x256xf32> to vector<1x8x256xf32>
    %16 = arith.addf %13, %15 : vector<1x8x256xf32>
    %c0_15 = arith.constant 0 : index
    %c0_16 = arith.constant 0 : index
    %c0_17 = arith.constant 0 : index
    %17 = vector.load %arg5[%c0_15, %c0_16, %c0_17] : memref<1x8x256xf32, #tpu.memory_space<vmem>>, vector<1x8x256xf32>
    tpu.vector_store %arg5[%c0_15, %c0_16, %c0_17], %16 {strides = array<i32>} : memref<1x8x256xf32, #tpu.memory_space<vmem>>, vector<1x8x256xf32>,
    return
  }
  func.func @transform_0(%arg0: i32, %arg1: i32) -> (i32, i32, i32) {
    %c2_i32 = arith.constant 2 : i32
    %0 = arith.muli %arg0, %c2_i32 : i32
    %1 = arith.addi %0, %arg1 : i32
    %c0_i32 = arith.constant 0 : i32
    %c0_i32_0 = arith.constant 0 : i32
    %c0_i32_1 = arith.constant 0 : i32
    return %c0_i32, %1, %c0_i32_0 : i32, i32, i32
  }
  func.func @transform_1(%arg0: i32, %arg1: i32) -> (i32, i32) {
    %c2_i32 = arith.constant 2 : i32
    %0 = arith.muli %arg0, %c2_i32 : i32
    %1 = arith.addi %0, %arg1 : i32
    %c0_i32 = arith.constant 0 : i32
    %c0_i32_0 = arith.constant 0 : i32
    return %1, %c0_i32 : i32, i32
  }
  func.func @transform_2(%arg0: i32, %arg1: i32) -> (i32, i32, i32) {
    %c0_i32 = arith.constant 0 : i32
    %c0_i32_0 = arith.constant 0 : i32
    %c0_i32_1 = arith.constant 0 : i32
    return %arg0, %c0_i32, %c0_i32_0 : i32, i32, i32
  }
  func.func @transform_3(%arg0: i32, %arg1: i32) -> (i32, i32, i32) {
    %c0_i32 = arith.constant 0 : i32
    %c0_i32_0 = arith.constant 0 : i32
    %c0_i32_1 = arith.constant 0 : i32
    return %arg0, %c0_i32, %c0_i32_0 : i32, i32, i32
  }
}

module attributes {stable_mosaic.version = 11 : i64} {
  func.func @_apply_kernel(%arg0: i32, %arg1: memref<8x8x256xf32, #tpu.memory_space<vmem>>, %arg2: memref<8x256xf32, #tpu.memory_space<vmem>>, %arg3: memref<8x1xf32, #tpu.memory_space<vmem>>, %arg4: memref<8x8x256xf32, #tpu.memory_space<vmem>>) attributes {dimension_semantics = [#tpu.dimension_semantics<parallel>], iteration_bounds = array<i64: 4>, scalar_prefetch = 0 : i64, scratch_operands = 0 : i64, tpu.core_type = #tpu.core_type<tc>, window_params = [{transform_indices = @transform_0, window_bounds = array<i64: 8, 8, 256>}, {transform_indices = @transform_1, window_bounds = array<i64: 8, 256>}, {pipeline_mode = #tpu.pipeline_mode<synchronous>, transform_indices = @transform_2, window_bounds = array<i64: 8, 1>}, {transform_indices = @transform_3, window_bounds = array<i64: 8, 8, 256>}]} {
    %c0 = arith.constant 0 : index
    %c0_0 = arith.constant 0 : index
    %c0_1 = arith.constant 0 : index
    %0 = vector.load %arg1[%c0, %c0_0, %c0_1] : memref<8x8x256xf32, #tpu.memory_space<vmem>>, vector<8x8x256xf32>
    %c0_2 = arith.constant 0 : index
    %c0_3 = arith.constant 0 : index
    %1 = vector.load %arg2[%c0_2, %c0_3] : memref<8x256xf32, #tpu.memory_space<vmem>>, vector<8x256xf32>
    %2 = vector.shape_cast %1 : vector<8x256xf32> to vector<1x8x256xf32>
    %3 = vector.broadcast %2 : vector<1x8x256xf32> to vector<8x8x256xf32>
    %4 = arith.mulf %0, %3 : vector<8x8x256xf32>
    %c0_4 = arith.constant 0 : index
    %c0_5 = arith.constant 0 : index
    %5 = vector.load %arg3[%c0_4, %c0_5] : memref<8x1xf32, #tpu.memory_space<vmem>>, vector<8x1xf32>
    %6 = vector.shape_cast %5 : vector<8x1xf32> to vector<8x1x1xf32>
    %7 = vector.broadcast %6 : vector<8x1x1xf32> to vector<8x8x256xf32>
    %8 = arith.mulf %4, %7 : vector<8x8x256xf32>
    %c0_6 = arith.constant 0 : index
    %c0_7 = arith.constant 0 : index
    %c0_8 = arith.constant 0 : index
    %9 = vector.load %arg4[%c0_6, %c0_7, %c0_8] : memref<8x8x256xf32, #tpu.memory_space<vmem>>, vector<8x8x256xf32>
    tpu.vector_store %arg4[%c0_6, %c0_7, %c0_8], %8 {strides = array<i32>} : memref<8x8x256xf32, #tpu.memory_space<vmem>>, vector<8x8x256xf32>,
    return
  }
  func.func @transform_0(%arg0: i32) -> (i32, i32, i32) {
    %c0_i32 = arith.constant 0 : i32
    %c0_i32_0 = arith.constant 0 : i32
    %c0_i32_1 = arith.constant 0 : i32
    return %c0_i32, %arg0, %c0_i32_0 : i32, i32, i32
  }
  func.func @transform_1(%arg0: i32) -> (i32, i32) {
    %c0_i32 = arith.constant 0 : i32
    %c0_i32_0 = arith.constant 0 : i32
    return %arg0, %c0_i32 : i32, i32
  }
  func.func @transform_2(%arg0: i32) -> (i32, i32) {
    %c0_i32 = arith.constant 0 : i32
    %c0_i32_0 = arith.constant 0 : i32
    %c0_i32_1 = arith.constant 0 : i32
    return %c0_i32, %c0_i32_0 : i32, i32
  }
  func.func @transform_3(%arg0: i32) -> (i32, i32, i32) {
    %c0_i32 = arith.constant 0 : i32
    %c0_i32_0 = arith.constant 0 : i32
    %c0_i32_1 = arith.constant 0 : i32
    return %c0_i32, %arg0, %c0_i32_0 : i32, i32, i32
  }
}

</mosaic_0001>

<bundles_post_ra>
// kernel: csam_forward.5
= control target key start
LH: loop header
LB: loop body
LE: loop exit
PB: predicated region body
PF: predicated region fallthrough
CT: control target
= control target key end

     0   :  { %s430_s9 = smov 0   ;;  %s432_s10 = smov 0   ;;  %s508_s0 = inlined_call_operand.vmem [shape: f32[8,32,256], index: 0, kind: input, shape index: {}]   ;;  %s509_s1 = inlined_call_operand.vmem [shape: f32[32,256], index: 1, kind: output, shape index: {0}]   ;;  %s510_s2 = inlined_call_operand.vmem [shape: f32[32,256], index: 2, kind: output, shape index: {1}]  }
   0x1   :  { %s434_s11 = smov 0  }
   0x2 LB: > { %s349_s12 = sadd.s32 4294967295, %s413_s11   ;;  %s447_s13 = sadd.s32 1, %s413_s11   ;;  %s413_s11 = sphi %s434_s11, %s513_s11   ;;  %s409_s10 = sphi %s432_s10, %s512_s10   ;;  %s405_s9 = sphi %s430_s9, %s511_s9  }
   0x3   : > { %s17_s14 = ssub.s32 %s413_s11, %s447_s13  ;;  %s20_s15 = sadd.s32 1, %s409_s10 }
   0x4   : > { %p18_p0 = scmp.eq.s32.totalorder %s17_s14, 0  ;;  %p27_p1 = scmp.ne.s32.totalorder %s409_s10, %s405_s9 }
   0x5   : > { %p28_p2 = scmp.eq.s32.totalorder %s413_s11, 0  ;;  %p352_p4 = scmp.ge.s32.totalorder %s413_s11, 4 }
   0x6   : > { %s456_s16 = scalar_select %p18_p0, %s409_s10, %s20_s15  }
   0x7   : > { %p29_p3 = por %p28_p2, %p27_p1  ;;  %105 = sbr.rel (%p352_p4) target bundleno = 32 (0x20), region = 16 }
   0xc   : > { %108 = sbr.rel (!%p29_p3) target bundleno = 32 (0x20), region = 20  ;;  %s110_s17 = sand.u32 (%p29_p3), 1, %s409_s10  }
   0xd   : > { %s364_s18 = sshll.u32 (%p29_p3), %s413_s11, 4  ;;  %s353_s19 = sshll.u32 (%p29_p3), %s110_s17, 7 }
   0xe   : > { %s464_s22 = scalar_lea.vmem (%p29_p3), %s508_s0, %s364_s18  ;;  %s112_s23 = scalar_lea.vmem (%p29_p3), [#allocation2], %s353_s19 }
   0xf   : > { %v128_v0 = vld [vmem:[%s464_s22] sm:$0xff] (%p29_p3)  ;;  %v130_v1 = vld [vmem:[%s464_s22 + $0x8] sm:$0xff] (%p29_p3) }
  0x10   : > { %v132_v2 = vld [vmem:[%s464_s22 + $0x40] sm:$0xff] (%p29_p3)  ;;  %129 = vst [vmem:[%s112_s23] sm:$0xff] (%p29_p3), %v128_v0  ;;  %v134_v3 = vld [vmem:[%s464_s22 + $0x48] sm:$0xff] (%p29_p3) }
  0x11   : > { %131 = vst [vmem:[%s112_s23 + $0x8] sm:$0xff] %v130_v1  ;;  %v136_v4 = vld [vmem:[%s464_s22 + $0x80] sm:$0xff]  ;;  %v138_v5 = vld [vmem:[%s464_s22 + $0x88] sm:$0xff] }
  0x12   : > { %133 = vst [vmem:[%s112_s23 + $0x10] sm:$0xff] %v132_v2  ;;  %v140_v6 = vld [vmem:[%s464_s22 + $0xc0] sm:$0xff]  ;;  %v142_v7 = vld [vmem:[%s464_s22 + $0xc8] sm:$0xff] }
  0x13   : > { %135 = vst [vmem:[%s112_s23 + $0x18] sm:$0xff] %v134_v3  ;;  %v144_v8 = vld [vmem:[%s464_s22 + $0x100] sm:$0xff]  ;;  %v146_v9 = vld [vmem:[%s464_s22 + $0x108] sm:$0xff] }
  0x14   : > { %137 = vst [vmem:[%s112_s23 + $0x20] sm:$0xff] %v136_v4  ;;  %v148_v10 = vld [vmem:[%s464_s22 + $0x140] sm:$0xff]  ;;  %v150_v11 = vld [vmem:[%s464_s22 + $0x148] sm:$0xff] }
  0x15   : > { %139 = vst [vmem:[%s112_s23 + $0x28] sm:$0xff] %v138_v5  ;;  %v152_v12 = vld [vmem:[%s464_s22 + $0x180] sm:$0xff]  ;;  %v154_v13 = vld [vmem:[%s464_s22 + $0x188] sm:$0xff] }
  0x16   : > { %141 = vst [vmem:[%s112_s23 + $0x30] sm:$0xff] %v140_v6  ;;  %v156_v14 = vld [vmem:[%s464_s22 + $0x1c0] sm:$0xff]  ;;  %v158_v15 = vld [vmem:[%s464_s22 + $0x1c8] sm:$0xff] }
  0x17   : > { %143 = vst [vmem:[%s112_s23 + $0x38] sm:$0xff] %v142_v7 }
  0x18   : > { %145 = vst [vmem:[%s112_s23 + $0x40] sm:$0xff] %v144_v8 }
  0x19   : > { %147 = vst [vmem:[%s112_s23 + $0x48] sm:$0xff] %v146_v9 }
  0x1a   : > { %149 = vst [vmem:[%s112_s23 + $0x50] sm:$0xff] %v148_v10 }
  0x1b   : > { %151 = vst [vmem:[%s112_s23 + $0x58] sm:$0xff] %v150_v11 }
  0x1c   : > { %153 = vst [vmem:[%s112_s23 + $0x60] sm:$0xff] %v152_v12 }
  0x1d   : > { %155 = vst [vmem:[%s112_s23 + $0x68] sm:$0xff] %v154_v13 }
  0x1e   : > { %157 = vst [vmem:[%s112_s23 + $0x70] sm:$0xff] %v156_v14 }
  0x1f   : > { %159 = vst [vmem:[%s112_s23 + $0x78] sm:$0xff] %v158_v15 }
  0x20 PF: > { %p356_p5 = scmp.ge.s32.totalorder %s413_s11, 1  ;;  %p164_p6 = scmp.lt.s32.totalorder %s413_s11, 5 }
  0x22   : > { %p165_p7 = pnand %p356_p5, %p164_p6 }
  0x23   : > { %s171_s24 = sand.u32 (!%p165_p7), 1, %s405_s9   ;;  %p197_p8 = scmp.lt.s32.totalorder (!%p165_p7), %s349_s12, 3 }
  0x24   : > { %168 = sbr.rel (%p165_p7) target bundleno = 58 (0x3a), region = 43  ;;  %s357_s25 = sshll.u32 (!%p165_p7), %s171_s24, 7 }
  0x25   : > { %s173_s26 = scalar_lea.vmem (!%p165_p7), [#allocation2], %s357_s25 }
  0x29   : > { %s515_s12 = smov (!%p197_p8, %s349_s12), 3  ;;  %v207_v16 = vld [vmem:[%s173_s26] sm:$0xff]  ;;  %v209_v17 = vld [vmem:[%s173_s26 + $0x10] sm:$0xff]  ;;  %v208_v27 = vld [vmem:[%s173_s26 + $0x8] sm:$0xff] }
  0x2a   : > { %v211_v18 = vld [vmem:[%s173_s26 + $0x20] sm:$0xff]  ;;  %v213_v19 = vld [vmem:[%s173_s26 + $0x30] sm:$0xff]  ;;  %v239_v23 = vadd.f32 %v209_v17, %v207_v16  ;;  %v210_v30 = vld [vmem:[%s173_s26 + $0x18] sm:$0xff]  ;;  %s365_s27 = sshll.u32 %s515_s12, 4 }
  0x2b   : > { %v215_v20 = vld [vmem:[%s173_s26 + $0x40] sm:$0xff]  ;;  %v217_v21 = vld [vmem:[%s173_s26 + $0x50] sm:$0xff]  ;;  %v223_v22 = vmax.f32 %v207_v16, %v211_v18  ;;  %v224_v26 = vmax.f32 %v209_v17, %v213_v19  ;;  %v212_v31 = vld [vmem:[%s173_s26 + $0x28] sm:$0xff]  ;;  %v246_v37 = vadd.f32 %v210_v30, %v208_v27  ;;  %s201_s30 = scalar_lea.vmem %s509_s1, %s365_s27  ;;  %s206_s5 = scalar_lea.vmem %s510_s2, %s365_s27 }
  0x2c   : > { %v219_v24 = vld [vmem:[%s173_s26 + $0x60] sm:$0xff]  ;;  %v221_v25 = vld [vmem:[%s173_s26 + $0x70] sm:$0xff]  ;;  %v240_v29 = vadd.f32 %v239_v23, %v211_v18  ;;  %v214_v32 = vld [vmem:[%s173_s26 + $0x38] sm:$0xff]  ;;  %v230_v35 = vmax.f32 %v208_v27, %v212_v31 }
  0x2d   : > { %v225_v28 = vmax.f32 %v223_v22, %v215_v20  ;;  %v226_v33 = vmax.f32 %v224_v26, %v217_v21  ;;  %v218_v34 = vld [vmem:[%s173_s26 + $0x58] sm:$0xff]  ;;  %v231_v36 = vmax.f32 %v210_v30, %v214_v32  ;;  %v216_v39 = vld [vmem:[%s173_s26 + $0x48] sm:$0xff]  ;;  %v247_v46 = vadd.f32 %v246_v37, %v212_v31 }
  0x2e   : > { %v220_v40 = vld [vmem:[%s173_s26 + $0x68] sm:$0xff]  ;;  %v222_v41 = vld [vmem:[%s173_s26 + $0x78] sm:$0xff]  ;;  %v241_v42 = vadd.f32 %v240_v29, %v213_v19  ;;  %v232_v44 = vmax.f32 %v230_v35, %v216_v39 }
  0x2f   : > { %v227_v38 = vmax.f32 %v225_v28, %v219_v24  ;;  %v228_v43 = vmax.f32 %v226_v33, %v221_v25  ;;  %v233_v45 = vmax.f32 %v231_v36, %v218_v34  ;;  %v248_v51 = vadd.f32 %v247_v46, %v214_v32 }
  0x30   : > { %v242_v47 = vadd.f32 %v241_v42, %v215_v20  ;;  %v234_v49 = vmax.f32 %v232_v44, %v220_v40 }
  0x31   : > { %v229_v48 = vmax.f32 %v227_v38, %v228_v43  ;;  %v235_v50 = vmax.f32 %v233_v45, %v222_v41  ;;  %v249_v54 = vadd.f32 %v248_v51, %v216_v39 }
  0x32   : > { %v243_v52 = vadd.f32 %v242_v47, %v217_v21 }
  0x33   : > { %237 = vst [vmem:[%s201_s30] sm:$0xff] %v229_v48  ;;  %v236_v53 = vmax.f32 %v234_v49, %v235_v50  ;;  %v250_v56 = vadd.f32 %v249_v54, %v218_v34 }
  0x34   : > { %v244_v55 = vadd.f32 %v243_v52, %v219_v24 }
  0x35   : > { %238 = vst [vmem:[%s201_s30 + $0x8] sm:$0xff] %v236_v53  ;;  %v251_v58 = vadd.f32 %v250_v56, %v220_v40 }
  0x36   : > { %v245_v57 = vadd.f32 %v244_v55, %v221_v25 }
  0x37   : > { %v252_v59 = vadd.f32 %v251_v58, %v222_v41 }
  0x38   : > { %253 = vst [vmem:[%s206_s5] sm:$0xff] %v245_v57 }
  0x39   : > { %254 = vst [vmem:[%s206_s5 + $0x8] sm:$0xff] %v252_v59 }
  0x3a PF: > { %p10_p9 = scmp.ge.s32.totalorder %s447_s13, 6   ;;  %s511_s9 = smov %s409_s10 }
  0x3b   : > { %s512_s10 = smov %s456_s16  ;;  %s513_s11 = smov %s447_s13 }
  0x3c   :  { %12 = sbr.rel (!%p10_p9) target bundleno = 2 (0x2), region = 94 }

// kernel: csam_forward.6
= control target key start
LH: loop header
LB: loop body
LE: loop exit
PB: predicated region body
PF: predicated region fallthrough
CT: control target
= control target key end

     0   :  { %s888_s12 = smov 0   ;;  %s890_s13 = smov 0   ;;  %s1199_s0 = inlined_call_operand.vmem [shape: f32[8,32,256], index: 0, kind: input, shape index: {}]   ;;  %s1200_s1 = inlined_call_operand.vmem [shape: f32[32,256], index: 1, kind: input, shape index: {}]   ;;  %s1201_s2 = inlined_call_operand.vmem [shape: f32[2,8,256], index: 2, kind: output, shape index: {0}]   ;;  %s1202_s3 = inlined_call_operand.vmem [shape: f32[2,8,256], index: 3, kind: output, shape index: {1}]  }
   0x1   :  { %s892_s14 = smov 0   ;;  %s894_s15 = smov 0  }
   0x2   :  { %s896_s16 = smov 0   ;;  %s898_s17 = smov 0  }
   0x3   :  { %s900_s18 = smov 0  }
   0x4 LB: > { %s23_s19 = sadd.s32 1, %s856_s16  ;;  %s26_s20 = sadd.s32 1, %s860_s17  ;;  %s864_s18 = sphi %s900_s18, %s14_s18   ;;  %s860_s17 = sphi %s898_s17, %s1232_s17   ;;  %s856_s16 = sphi %s896_s16, %s1231_s16   ;;  %s852_s15 = sphi %s894_s15, %s1230_s15   ;;  %s848_s14 = sphi %s892_s14, %s1229_s14   ;;  %s844_s13 = sphi %s890_s13, %s1228_s13   ;;  %s840_s12 = sphi %s888_s12, %s1227_s12  }
   0x5   : > { %p24_p0 = scmp.ge.s32.totalorder %s23_s19, 2  ;;  %p44_p1 = scmp.ne.s32.totalorder %s844_s13, %s840_s12 }
   0x6   : > { %p45_p2 = scmp.eq.s32.totalorder %s864_s18, 0  ;;  %s726_s21 = sshll.u32 %s860_s17, 1 }
   0x7   : > { %s1234_s19 = smov (%p24_p0, %s23_s19), 0  ;;  %s1236_s20 = smov (!%p24_p0, %s26_s20), %s860_s17 }
   0x8   : > { %p28_p3 = scmp.ge.s32.totalorder %s1236_s20, 2  ;;  %p46_p4 = por %p45_p2, %p44_p1 }
   0x9   : > { %s31_s22 = sadd.s32 %s856_s16, %s726_s21  ;;  %s37_s26 = sadd.s32 1, %s844_s13 }
   0xa   : > { %s1238_s20 = smov (%p28_p3, %s1236_s20), 0  ;;  %p731_p6 = scmp.ge.s32.totalorder %s864_s18, 4 }
   0xb   : > { %s727_s23 = sshll.u32 %s1238_s20, 1 }
   0xc   : > { %s33_s24 = sadd.s32 %s727_s23, %s1234_s19  ;;  %152 = sbr.rel (%p731_p6) target bundleno = 37 (0x25), region = 16 }
   0xd   : > { %s34_s25 = ssub.s32 %s31_s22, %s33_s24 }
   0xe   : > { %p35_p5 = scmp.eq.s32.totalorder %s34_s25, 0 }
  0x10   : > { %s939_s27 = scalar_select %p35_p5, %s844_s13, %s37_s26  }
  0x11   : > { %155 = sbr.rel (!%p46_p4) target bundleno = 37 (0x25), region = 20  ;;  %s157_s28 = sand.u32 (%p46_p4), 1, %s844_s13  }
  0x12   : > { %s748_s29 = sshll.u32 (%p46_p4), %s31_s22, 4  ;;  %s732_s30 = sshll.u32 (%p46_p4), %s157_s28, 7 }
  0x13   : > { %s946_s6 = scalar_lea.vmem (%p46_p4), %s1199_s0, %s748_s29  ;;  %s159_s7 = scalar_lea.vmem (%p46_p4), [#allocation2], %s732_s30 }
  0x14   : > { %v177_v0 = vld [vmem:[%s946_s6] sm:$0xff] (%p46_p4)  ;;  %v179_v1 = vld [vmem:[%s946_s6 + $0x8] sm:$0xff] (%p46_p4) }
  0x15   : > { %v181_v2 = vld [vmem:[%s946_s6 + $0x40] sm:$0xff] (%p46_p4)  ;;  %178 = vst [vmem:[%s159_s7] sm:$0xff] (%p46_p4), %v177_v0  ;;  %v183_v3 = vld [vmem:[%s946_s6 + $0x48] sm:$0xff] (%p46_p4) }
  0x16   : > { %180 = vst [vmem:[%s159_s7 + $0x8] sm:$0xff] %v179_v1  ;;  %v185_v4 = vld [vmem:[%s946_s6 + $0x80] sm:$0xff]  ;;  %v187_v5 = vld [vmem:[%s946_s6 + $0x88] sm:$0xff] }
  0x17   : > { %182 = vst [vmem:[%s159_s7 + $0x10] sm:$0xff] %v181_v2  ;;  %v189_v6 = vld [vmem:[%s946_s6 + $0xc0] sm:$0xff]  ;;  %v191_v7 = vld [vmem:[%s946_s6 + $0xc8] sm:$0xff] }
  0x18   : > { %184 = vst [vmem:[%s159_s7 + $0x18] sm:$0xff] %v183_v3  ;;  %v193_v8 = vld [vmem:[%s946_s6 + $0x100] sm:$0xff]  ;;  %v195_v9 = vld [vmem:[%s946_s6 + $0x108] sm:$0xff] }
  0x19   : > { %186 = vst [vmem:[%s159_s7 + $0x20] sm:$0xff] %v185_v4  ;;  %v197_v10 = vld [vmem:[%s946_s6 + $0x140] sm:$0xff]  ;;  %v199_v11 = vld [vmem:[%s946_s6 + $0x148] sm:$0xff] }
  0x1a   : > { %188 = vst [vmem:[%s159_s7 + $0x28] sm:$0xff] %v187_v5  ;;  %v201_v12 = vld [vmem:[%s946_s6 + $0x180] sm:$0xff]  ;;  %v203_v13 = vld [vmem:[%s946_s6 + $0x188] sm:$0xff] }
  0x1b   : > { %190 = vst [vmem:[%s159_s7 + $0x30] sm:$0xff] %v189_v6  ;;  %v205_v14 = vld [vmem:[%s946_s6 + $0x1c0] sm:$0xff]  ;;  %v207_v15 = vld [vmem:[%s946_s6 + $0x1c8] sm:$0xff] }
  0x1c   : > { %192 = vst [vmem:[%s159_s7 + $0x38] sm:$0xff] %v191_v7 }
  0x1d   : > { %194 = vst [vmem:[%s159_s7 + $0x40] sm:$0xff] %v193_v8 }
  0x1e   : > { %196 = vst [vmem:[%s159_s7 + $0x48] sm:$0xff] %v195_v9 }
  0x1f   : > { %198 = vst [vmem:[%s159_s7 + $0x50] sm:$0xff] %v197_v10 }
  0x20   : > { %200 = vst [vmem:[%s159_s7 + $0x58] sm:$0xff] %v199_v11 }
  0x21   : > { %202 = vst [vmem:[%s159_s7 + $0x60] sm:$0xff] %v201_v12 }
  0x22   : > { %204 = vst [vmem:[%s159_s7 + $0x68] sm:$0xff] %v203_v13 }
  0x23   : > { %206 = vst [vmem:[%s159_s7 + $0x70] sm:$0xff] %v205_v14 }
  0x24   : > { %208 = vst [vmem:[%s159_s7 + $0x78] sm:$0xff] %v207_v15 }
  0x25 PF: > { %p736_p7 = scmp.ge.s32.totalorder %s864_s18, 1  ;;  %p225_p8 = scmp.lt.s32.totalorder %s864_s18, 5 }
  0x27   : > { %p226_p9 = pnand %p736_p7, %p225_p8 }
  0x28   : > { %s232_s8 = sand.u32 (!%p226_p9), 1, %s840_s12   ;;  %s738_s9 = sshll.u32 (!%p226_p9), %s852_s15, 1 }
  0x29   : > { %229 = sbr.rel (%p226_p9) target bundleno = 130 (0x82), region = 47  ;;  %s737_s10 = sshll.u32 (!%p226_p9), %s232_s8, 7 }
  0x2a   : > { %s270_s11 = sadd.s32 (!%p226_p9), %s848_s14, %s738_s9  ;;  %p278_p11 = scmp.lt.s32.totalorder (!%p226_p9), %s852_s15, 1 }
  0x2b   : > { %p271_p10 = scmp.lt.s32.totalorder (!%p226_p9), %s270_s11, 3  ;;  %s234_s5 = scalar_lea.vmem (!%p226_p9), [#allocation2], %s737_s10 }
  0x2c   : > { %p745_p12 = scmp.ne.s32.totalorder (!%p226_p9), %s848_s14, 0 }
  0x2e   : > { %s1240_s11 = smov (!%p271_p10, %s270_s11), 3  ;;  %s1242_s15 = smov (!%p278_p11, %s852_s15), 1 }
  0x2f   : > { %s749_s21 = sshll.u32 %s1240_s11, 4  ;;  %s750_s25 = sshll.u32 %s1242_s15, 4 }
  0x30   : > { %s275_s24 = scalar_lea.vmem %s1200_s1, %s749_s21  ;;  %s977_s29 = scalar_lea.vmem %s1201_s2, %s750_s25 }
  0x31   : > { %s982_s4 = scalar_lea.vmem %s1202_s3, %s750_s25  ;;  %291 = sbr.rel (%p745_p12) target bundleno = 59 (0x3b), region = 55 }
  0x36   : > { %v866_v16 = vmov -inf   ;;  %v867_v17 = vmov 0.0  }
  0x37   : > { %292 = vst [vmem:[%s977_s29] sm:$0xff] %v866_v16 }
  0x38   : > { %293 = vst [vmem:[%s977_s29 + $0x8] sm:$0xff] %v866_v16 }
  0x39   : > { %294 = vst [vmem:[%s982_s4] sm:$0xff] %v867_v17 }
  0x3a   : > { %295 = vst [vmem:[%s982_s4 + $0x8] sm:$0xff] %v867_v17 }
  0x3b PF: > { %v296_v18 = vld [vmem:[%s234_s5] sm:$0xff]  ;;  %v297_v19 = vld [vmem:[%s234_s5 + $0x8] sm:$0xff]  ;;  %v298_v20 = vld [vmem:[%s234_s5 + $0x10] sm:$0xff]  ;;  %vm444_vm0 = vcmask 1041409   ;;  %vm446_vm1 = vcmask 1042434   ;;  %vm448_vm2 = vcmask 1043459  }
  0x3c   : > { %v299_v21 = vld [vmem:[%s234_s5 + $0x18] sm:$0xff]  ;;  %v300_v22 = vld [vmem:[%s234_s5 + $0x20] sm:$0xff]  ;;  %v301_v23 = vld [vmem:[%s234_s5 + $0x28] sm:$0xff]  ;;  %vm450_vm3 = vcmask 1044484   ;;  %vm452_vm4 = vcmask 1045509   ;;  %vm454_vm5 = vcmask 1046534  }
  0x3d   : > { %v302_v24 = vld [vmem:[%s234_s5 + $0x30] sm:$0xff]  ;;  %v303_v25 = vld [vmem:[%s234_s5 + $0x38] sm:$0xff]  ;;  %v304_v26 = vld [vmem:[%s234_s5 + $0x40] sm:$0xff]  ;;  %vm456_vm6 = vcmask 1047559  }
  0x3e   : > { %v305_v27 = vld [vmem:[%s234_s5 + $0x48] sm:$0xff]  ;;  %v306_v28 = vld [vmem:[%s234_s5 + $0x50] sm:$0xff]  ;;  %v307_v29 = vld [vmem:[%s234_s5 + $0x58] sm:$0xff] }
  0x3f   : > { %v308_v30 = vld [vmem:[%s234_s5 + $0x60] sm:$0xff]  ;;  %v313_v32 = vld [vmem:[%s275_s24 + $0x8] sm:$0xff]  ;;  %v310_v34 = vld [vmem:[%s234_s5 + $0x70] sm:$0xff] }
  0x40   : > { %v312_v31 = vld [vmem:[%s275_s24] sm:$0xff]  ;;  %v309_v33 = vld [vmem:[%s234_s5 + $0x68] sm:$0xff]  ;;  %v311_v35 = vld [vmem:[%s234_s5 + $0x78] sm:$0xff]  ;;  %v991_v37 = vmul.f32 %v313_v32, %v297_v19  ;;  %v995_v39 = vmul.f32 %v313_v32, %v299_v21  ;;  %v999_v41 = vmul.f32 %v313_v32, %v301_v23  ;;  %v1003_v43 = vmul.f32 %v313_v32, %v303_v25 }
  0x41   : > { %v989_v36 = vmul.f32 %v312_v31, %v296_v18  ;;  %v993_v38 = vmul.f32 %v312_v31, %v298_v20  ;;  %v997_v40 = vmul.f32 %v312_v31, %v300_v22  ;;  %v1001_v42 = vmul.f32 %v312_v31, %v302_v24 }
  0x42   : > { %v1005_v44 = vmul.f32 %v312_v31, %v304_v26  ;;  %v1007_v45 = vmul.f32 %v313_v32, %v305_v27  ;;  %v1009_v46 = vmul.f32 %v312_v31, %v306_v28  ;;  %v1011_v47 = vmul.f32 %v313_v32, %v307_v29 }
  0x43   : > { %v1013_v48 = vmul.f32 %v312_v31, %v308_v30  ;;  %v1015_v49 = vmul.f32 %v313_v32, %v309_v33  ;;  %v1017_v50 = vmul.f32 %v312_v31, %v310_v34  ;;  %v1019_v51 = vmul.f32 %v313_v32, %v311_v35 }
  0x44   : > { %v332_v52 = vrot.slane %v989_v36, 4  ;;  %v338_v53 = vrot.slane %v991_v37, 4  ;;  %v344_v54 = vrot.slane %v993_v38, 4  ;;  %v350_v55 = vrot.slane %v995_v39, 4 }
  0x45   : > { %v1214_v56 = vrot.slane %v997_v40, 4  ;;  %v1213_v57 = vrot.slane %v999_v41, 4  ;;  %v1212_v58 = vrot.slane %v1001_v42, 4  ;;  %v1211_v59 = vrot.slane %v1003_v43, 4 }
  0x46   : > { %v333_v60 = vmax.f32 %v989_v36, %v332_v52  ;;  %v339_v61 = vmax.f32 %v991_v37, %v338_v53  ;;  %v345_v62 = vmax.f32 %v993_v38, %v344_v54  ;;  %v351_v63 = vmax.f32 %v995_v39, %v350_v55 }
  0x47   : > { %v357_v0 = vmax.f32 %v997_v40, %v1214_v56  ;;  %v363_v1 = vmax.f32 %v999_v41, %v1213_v57  ;;  %v369_v2 = vmax.f32 %v1001_v42, %v1212_v58  ;;  %v375_v3 = vmax.f32 %v1003_v43, %v1211_v59 }
  0x48   : > { %v334_v4 = vrot.slane %v333_v60, 2  ;;  %v340_v5 = vrot.slane %v339_v61, 2  ;;  %v346_v6 = vrot.slane %v345_v62, 2  ;;  %v352_v7 = vrot.slane %v351_v63, 2 }
  0x49   : > { %v358_v8 = vrot.slane %v357_v0, 2  ;;  %v364_v9 = vrot.slane %v363_v1, 2  ;;  %v370_v10 = vrot.slane %v369_v2, 2  ;;  %v376_v11 = vrot.slane %v375_v3, 2 }
  0x4a   : > { %v335_v12 = vmax.f32 %v333_v60, %v334_v4  ;;  %v341_v13 = vmax.f32 %v339_v61, %v340_v5  ;;  %v347_v14 = vmax.f32 %v345_v62, %v346_v6  ;;  %v353_v15 = vmax.f32 %v351_v63, %v352_v7 }
  0x4b   : > { %v359_v16 = vmax.f32 %v357_v0, %v358_v8  ;;  %v365_v17 = vmax.f32 %v363_v1, %v364_v9  ;;  %v371_v18 = vmax.f32 %v369_v2, %v370_v10  ;;  %v377_v19 = vmax.f32 %v375_v3, %v376_v11 }
  0x4c   : > { %v336_v20 = vrot.slane %v335_v12, 1  ;;  %v342_v21 = vrot.slane %v341_v13, 1  ;;  %v348_v22 = vrot.slane %v347_v14, 1  ;;  %v354_v23 = vrot.slane %v353_v15, 1 }
  0x4d   : > { %v360_v24 = vrot.slane %v359_v16, 1  ;;  %v366_v25 = vrot.slane %v365_v17, 1  ;;  %v372_v26 = vrot.slane %v371_v18, 1  ;;  %v378_v27 = vrot.slane %v377_v19, 1 }
  0x4e   : > { %v337_v28 = vmax.f32 %v335_v12, %v336_v20  ;;  %v1053_v29 = vmax.f32 %v341_v13, %v342_v21  ;;  %v349_v30 = vmax.f32 %v347_v14, %v348_v22  ;;  %v355_v31 = vmax.f32 %v353_v15, %v354_v23 }
  0x4f   : > { %v361_v32 = vmax.f32 %v359_v16, %v360_v24  ;;  %v367_v33 = vmax.f32 %v365_v17, %v366_v25  ;;  %v1055_v34 = vmax.f32 %v371_v18, %v372_v26  ;;  %v1057_v35 = vmax.f32 %v377_v19, %v378_v27 }
  0x50   : > { %v1210_v60 = vrot.slane %v1005_v44, 4  ;;  %v1209_v61 = vrot.slane %v1007_v45, 4  ;;  %v1208_v62 = vrot.slane %v1009_v46, 4  ;;  %v1207_v63 = vrot.slane %v1011_v47, 4 }
  0x51   : > { %v1206_v0 = vrot.slane %v1013_v48, 4  ;;  %v1205_v1 = vrot.slane %v1015_v49, 4  ;;  %v1204_v2 = vrot.slane %v1017_v50, 4  ;;  %v1203_v3 = vrot.slane %v1019_v51, 4 }
  0x52   : > { %v381_v4 = vmax.f32 %v1005_v44, %v1210_v60  ;;  %v387_v5 = vmax.f32 %v1007_v45, %v1209_v61  ;;  %v393_v6 = vmax.f32 %v1009_v46, %v1208_v62  ;;  %v399_v7 = vmax.f32 %v1011_v47, %v1207_v63 }
  0x53   : > { %v405_v8 = vmax.f32 %v1013_v48, %v1206_v0  ;;  %v411_v9 = vmax.f32 %v1015_v49, %v1205_v1  ;;  %v417_v10 = vmax.f32 %v1017_v50, %v1204_v2  ;;  %v423_v11 = vmax.f32 %v1019_v51, %v1203_v3 }
  0x54   : > { %v382_v12 = vrot.slane %v381_v4, 2  ;;  %v388_v13 = vrot.slane %v387_v5, 2  ;;  %v394_v14 = vrot.slane %v393_v6, 2  ;;  %v400_v15 = vrot.slane %v399_v7, 2 }
  0x55   : > { %v406_v16 = vrot.slane %v405_v8, 2  ;;  %v412_v17 = vrot.slane %v411_v9, 2  ;;  %v418_v18 = vrot.slane %v417_v10, 2  ;;  %v424_v19 = vrot.slane %v423_v11, 2 }
  0x56   : > { %v383_v20 = vmax.f32 %v381_v4, %v382_v12  ;;  %v389_v21 = vmax.f32 %v387_v5, %v388_v13  ;;  %v395_v22 = vmax.f32 %v393_v6, %v394_v14  ;;  %v401_v23 = vmax.f32 %v399_v7, %v400_v15 }
  0x57   : > { %v407_v24 = vmax.f32 %v405_v8, %v406_v16  ;;  %v413_v25 = vmax.f32 %v411_v9, %v412_v17  ;;  %v419_v26 = vmax.f32 %v417_v10, %v418_v18  ;;  %v425_v27 = vmax.f32 %v423_v11, %v424_v19 }
  0x58   : > { %v384_v3 = vrot.slane %v383_v20, 1  ;;  %v390_v2 = vrot.slane %v389_v21, 1  ;;  %v396_v1 = vrot.slane %v395_v22, 1  ;;  %v402_v0 = vrot.slane %v401_v23, 1 }
  0x59   : > { %v408_v63 = vrot.slane %v407_v24, 1  ;;  %v414_v62 = vrot.slane %v413_v25, 1  ;;  %v420_v61 = vrot.slane %v419_v26, 1  ;;  %v426_v60 = vrot.slane %v425_v27, 1 }
  0x5a   : > { %v385_v59 = vmax.f32 %v383_v20, %v384_v3  ;;  %v391_v58 = vmax.f32 %v389_v21, %v390_v2  ;;  %v397_v57 = vmax.f32 %v395_v22, %v396_v1  ;;  %v403_v56 = vmax.f32 %v401_v23, %v402_v0 }
  0x5b   : > { %v409_v4 = vmax.f32 %v407_v24, %v408_v63  ;;  %v415_v5 = vmax.f32 %v413_v25, %v414_v62  ;;  %v421_v6 = vmax.f32 %v419_v26, %v420_v61  ;;  %v427_v7 = vmax.f32 %v425_v27, %v426_v60 }
  0x5c   : > { %v445_v8 = vsel %vm444_vm0, %v349_v30, %v337_v28  ;;  %v458_v9 = vsel %vm444_vm0, %v355_v31, %v1053_v29  ;;  %v474_v63 = vadd.f32 %v332_v52, %v989_v36  ;;  %v480_v60 = vadd.f32 %v338_v53, %v991_v37  ;;  %v330_v53 = vld [vmem:[%s977_s29] sm:$0xff] }
  0x5d   : > { %v447_v10 = vsel %vm446_vm1, %v361_v32, %v445_v8  ;;  %v459_v3 = vsel %vm446_vm1, %v367_v33, %v458_v9  ;;  %v486_v29 = vadd.f32 %v344_v54, %v993_v38  ;;  %v492_v31 = vadd.f32 %v350_v55, %v995_v39  ;;  %v331_v33 = vld [vmem:[%s977_s29 + $0x8] sm:$0xff] }
  0x5e   : > { %v449_v28 = vsel %vm448_vm2, %v1055_v34, %v447_v10  ;;  %v460_v30 = vsel %vm448_vm2, %v1057_v35, %v459_v3  ;;  %v475_v32 = vrot.slane %v474_v63, 2  ;;  %v481_v37 = vrot.slane %v480_v60, 2 }
  0x5f   : > { %v451_v36 = vsel %vm450_vm3, %v385_v59, %v449_v28  ;;  %v461_v52 = vsel %vm450_vm3, %v391_v58, %v460_v30  ;;  %v487_v61 = vrot.slane %v486_v29, 2  ;;  %v493_v62 = vrot.slane %v492_v31, 2 }
  0x60   : > { %v453_v34 = vsel %vm452_vm4, %v397_v57, %v451_v36  ;;  %v462_v35 = vsel %vm452_vm4, %v403_v56, %v461_v52  ;;  %v476_v39 = vadd.f32 %v475_v32, %v474_v63  ;;  %v482_v55 = vadd.f32 %v481_v37, %v480_v60 }
  0x61   : > { %v455_v38 = vsel %vm454_vm5, %v409_v4, %v453_v34  ;;  %v463_v54 = vsel %vm454_vm5, %v415_v5, %v462_v35  ;;  %v488_v0 = vadd.f32 %v487_v61, %v486_v29  ;;  %v494_v1 = vadd.f32 %v493_v62, %v492_v31 }
  0x62   : > { %v457_v59 = vsel %vm456_vm6, %v421_v6, %v455_v38  ;;  %v464_v58 = vsel %vm456_vm6, %v427_v7, %v463_v54  ;;  %v477_v11 = vrot.slane %v476_v39, 1  ;;  %v483_v56 = vrot.slane %v482_v55, 1 }
  0x63   : > { %v467_v2 = vmax.f32 %v330_v53, %v457_v59  ;;  %v468_v57 = vmax.f32 %v331_v33, %v464_v58  ;;  %v489_v12 = vrot.slane %v488_v0, 1  ;;  %v495_v13 = vrot.slane %v494_v1, 1 }
  0x64   : > { %v1215_v14 = vrot.slane %v997_v40, 4  ;;  %v1216_v16 = vrot.slane %v999_v41, 4  ;;  %v478_v18 = vadd.f32 %v477_v11, %v476_v39  ;;  %v484_v19 = vadd.f32 %v483_v56, %v482_v55 }
  0x65   : > { %469 = vst [vmem:[%s977_s29] sm:$0xff] %v467_v2  ;;  %v1217_v20 = vrot.slane %v1001_v42, 4  ;;  %v1218_v22 = vrot.slane %v1003_v43, 4  ;;  %v490_v24 = vadd.f32 %v489_v12, %v488_v0  ;;  %v496_v25 = vadd.f32 %v495_v13, %v494_v1 }
  0x66   : > { %v498_v15 = vadd.f32 %v1215_v14, %v997_v40  ;;  %v504_v17 = vadd.f32 %v1216_v16, %v999_v41  ;;  %470 = vst [vmem:[%s977_s29 + $0x8] sm:$0xff] %v468_v57  ;;  %v1219_v41 = vrot.slane %v1005_v44, 4  ;;  %v1220_v6 = vrot.slane %v1007_v45, 4 }
  0x67   : > { %v510_v21 = vadd.f32 %v1217_v20, %v1001_v42  ;;  %v516_v23 = vadd.f32 %v1218_v22, %v1003_v43  ;;  %v1221_v43 = vrot.slane %v1009_v46, 4  ;;  %v1222_v10 = vrot.slane %v1011_v47, 4 }
  0x68   : > { %v499_v26 = vrot.slane %v498_v15, 2  ;;  %v505_v40 = vrot.slane %v504_v17, 2  ;;  %v522_v5 = vadd.f32 %v1219_v41, %v1005_v44  ;;  %v528_v7 = vadd.f32 %v1220_v6, %v1007_v45 }
  0x69   : > { %v511_v27 = vrot.slane %v510_v21, 2  ;;  %v517_v4 = vrot.slane %v516_v23, 2  ;;  %v534_v9 = vadd.f32 %v1221_v43, %v1009_v46  ;;  %v540_v3 = vadd.f32 %v1222_v10, %v1011_v47 }
  0x6a   : > { %v500_v42 = vadd.f32 %v499_v26, %v498_v15  ;;  %v506_v8 = vadd.f32 %v505_v40, %v504_v17  ;;  %v523_v28 = vrot.slane %v522_v5, 2  ;;  %v529_v30 = vrot.slane %v528_v7, 2 }
  0x6b   : > { %v512_v63 = vadd.f32 %v511_v27, %v510_v21  ;;  %v518_v60 = vadd.f32 %v517_v4, %v516_v23  ;;  %v535_v31 = vrot.slane %v534_v9, 2  ;;  %v541_v36 = vrot.slane %v540_v3, 2 }
  0x6c   : > { %v501_v29 = vrot.slane %v500_v42, 1  ;;  %v507_v44 = vrot.slane %v506_v8, 1  ;;  %v524_v32 = vadd.f32 %v523_v28, %v522_v5  ;;  %v530_v37 = vadd.f32 %v529_v30, %v528_v7 }
  0x6d   : > { %v513_v52 = vrot.slane %v512_v63, 1  ;;  %v519_v45 = vrot.slane %v518_v60, 1  ;;  %v536_v34 = vadd.f32 %v535_v31, %v534_v9  ;;  %v542_v46 = vadd.f32 %v541_v36, %v540_v3 }
  0x6e   : > { %v502_v53 = vadd.f32 %v501_v29, %v500_v42  ;;  %v508_v33 = vadd.f32 %v507_v44, %v506_v8  ;;  %v525_v62 = vrot.slane %v524_v32, 1  ;;  %v531_v47 = vrot.slane %v530_v37, 1  ;;  %v471_v42 = vld [vmem:[%s982_s4] sm:$0xff]  ;;  %v472_v8 = vld [vmem:[%s982_s4 + $0x8] sm:$0xff] }
  0x6f   : > { %v514_v35 = vadd.f32 %v513_v52, %v512_v63  ;;  %v520_v61 = vadd.f32 %v519_v45, %v518_v60  ;;  %v537_v38 = vrot.slane %v536_v34, 1  ;;  %v543_v54 = vrot.slane %v542_v46, 1 }
  0x70   : > { %v1223_v39 = vrot.slane %v1013_v48, 4  ;;  %v1224_v59 = vrot.slane %v1015_v49, 4  ;;  %v526_v0 = vadd.f32 %v525_v62, %v524_v32  ;;  %v532_v1 = vadd.f32 %v531_v47, %v530_v37 }
  0x71   : > { %v1225_v2 = vrot.slane %v1017_v50, 4  ;;  %v1226_v11 = vrot.slane %v1019_v51, 4  ;;  %v538_v12 = vadd.f32 %v537_v38, %v536_v34  ;;  %v544_v13 = vadd.f32 %v543_v54, %v542_v46 }
  0x72   : > { %v546_v55 = vadd.f32 %v1223_v39, %v1013_v48  ;;  %v552_v58 = vadd.f32 %v1224_v59, %v1015_v49  ;;  %v585_v17 = vsel %vm444_vm0, %v490_v24, %v478_v18  ;;  %v592_v49 = vsel %vm444_vm0, %v496_v25, %v484_v19 }
  0x73   : > { %v558_v57 = vadd.f32 %v1225_v2, %v1017_v50  ;;  %v564_v56 = vadd.f32 %v1226_v11, %v1019_v51  ;;  %v586_v22 = vsel %vm446_vm1, %v502_v53, %v585_v17  ;;  %v593_v50 = vsel %vm446_vm1, %v508_v33, %v592_v49 }
  0x74   : > { %v547_v14 = vrot.slane %v546_v55, 2  ;;  %v553_v15 = vrot.slane %v552_v58, 2  ;;  %v587_v26 = vsel %vm448_vm2, %v514_v35, %v586_v22  ;;  %v594_v40 = vsel %vm448_vm2, %v520_v61, %v593_v50 }
  0x75   : > { %v559_v16 = vrot.slane %v558_v57, 2  ;;  %v565_v48 = vrot.slane %v564_v56, 2  ;;  %v588_v18 = vsel %vm450_vm3, %v526_v0, %v587_v26  ;;  %v595_v19 = vsel %vm450_vm3, %v532_v1, %v594_v40 }
  0x76   : > { %v548_v20 = vadd.f32 %v547_v14, %v546_v55  ;;  %v554_v21 = vadd.f32 %v553_v15, %v552_v58  ;;  %v589_v41 = vsel %vm452_vm4, %v538_v12, %v588_v18  ;;  %v596_v5 = vsel %vm452_vm4, %v544_v13, %v595_v19 }
  0x77   : > { %v560_v23 = vadd.f32 %v559_v16, %v558_v57  ;;  %v566_v51 = vadd.f32 %v565_v48, %v564_v56 }
  0x78   : > { %v549_v27 = vrot.slane %v548_v20, 1  ;;  %v555_v4 = vrot.slane %v554_v21, 1 }
  0x79   : > { %v561_v24 = vrot.slane %v560_v23, 1  ;;  %v567_v25 = vrot.slane %v566_v51, 1 }
  0x7a   : > { %v550_v6 = vadd.f32 %v549_v27, %v548_v20  ;;  %v556_v7 = vadd.f32 %v555_v4, %v554_v21 }
  0x7b   : > { %v562_v43 = vadd.f32 %v561_v24, %v560_v23  ;;  %v568_v9 = vadd.f32 %v567_v25, %v566_v51 }
  0x7c   : > { %v590_v10 = vsel %vm454_vm5, %v550_v6, %v589_v41  ;;  %v597_v3 = vsel %vm454_vm5, %v556_v7, %v596_v5 }
  0x7d   : > { %v591_v63 = vsel %vm456_vm6, %v562_v43, %v590_v10  ;;  %v598_v60 = vsel %vm456_vm6, %v568_v9, %v597_v3 }
  0x7e   : > { %v601_v28 = vadd.f32 %v591_v63, %v471_v42  ;;  %v602_v30 = vadd.f32 %v598_v60, %v472_v8 }
  0x80   : > { %603 = vst [vmem:[%s982_s4] sm:$0xff] %v601_v28 }
  0x81   : > { %604 = vst [vmem:[%s982_s4 + $0x8] sm:$0xff] %v602_v30 }
  0x82 PF: > { %s14_s18 = sadd.s32 1, %s864_s18   ;;  %s1227_s12 = smov %s844_s13 }
  0x83   : > { %p11_p13 = scmp.ge.s32.totalorder %s14_s18, 6   ;;  %s1228_s13 = smov %s939_s27 }
  0x84   : > { %s1229_s14 = smov %s856_s16  ;;  %s1230_s15 = smov %s860_s17 }
  0x85   : > { %s1231_s16 = smov %s1234_s19  ;;  %s1232_s17 = smov %s1238_s20 }
  0x86   :  { %13 = sbr.rel (!%p11_p13) target bundleno = 4 (0x4), region = 105 }

// kernel: csam_forward.7
= control target key start
LH: loop header
LB: loop body
LE: loop exit
PB: predicated region body
PF: predicated region fallthrough
CT: control target
= control target key end

     0   :  { %s568_s12 = smov 0   ;;  %s570_s13 = smov 0   ;;  %s706_s0 = inlined_call_operand.vmem [shape: f32[8,32,256], index: 0, kind: input, shape index: {}]   ;;  %s707_s1 = inlined_call_operand.vmem [shape: f32[32,256], index: 1, kind: input, shape index: {}]   ;;  %s708_s2 = inlined_call_operand.vmem [shape: f32[8,1], index: 2, kind: input, shape index: {}]   ;;  %s709_s3 = inlined_call_operand.vmem [shape: f32[8,32,256], index: 3, kind: output, shape index: {}]  }
   0x1   :  { %s572_s14 = smov 0  }
   0x2 LB: > { %s584_s15 = sadd.s32 4294967295, %s545_s14   ;;  %s587_s16 = sadd.s32 1, %s545_s14   ;;  %s545_s14 = sphi %s572_s14, %s713_s14   ;;  %s541_s13 = sphi %s570_s13, %s712_s13   ;;  %s537_s12 = sphi %s568_s12, %s711_s12  }
   0x3   : > { %s17_s17 = ssub.s32 %s545_s14, %s587_s16  ;;  %s20_s18 = sadd.s32 1, %s541_s13 }
   0x4   : > { %p18_p0 = scmp.eq.s32.totalorder %s17_s17, 0  ;;  %p27_p1 = scmp.ne.s32.totalorder %s541_s13, %s537_s12 }
   0x5   : > { %p28_p2 = scmp.eq.s32.totalorder %s545_s14, 0  ;;  %p104_p3 = scmp.eq.s32.totalorder %s584_s15, 3 }
   0x6   : > { %s597_s19 = scalar_select %p18_p0, %s541_s13, %s20_s18  }
   0x7   : > { %p29_p4 = por %p28_p2, %p27_p1  ;;  %p599_p5 = por %p104_p3, %p27_p1 }
   0x8   : > { %p478_p6 = scmp.ge.s32.totalorder %s545_s14, 4 }
   0xa   : > { %129 = sbr.rel (%p478_p6) target bundleno = 35 (0x23), region = 20 }
   0xf   : > { %132 = sbr.rel (!%p29_p4) target bundleno = 35 (0x23), region = 24  ;;  %s134_s21 = sand.u32 (%p29_p4), 1, %s541_s13  }
  0x10   : > { %s492_s22 = sshll.u32 (%p29_p4), %s545_s14, 4  ;;  %s479_s23 = sshll.u32 (%p29_p4), %s134_s21, 7 }
  0x11   : > { %s609_s26 = scalar_lea.vmem (%p29_p4), %s706_s0, %s492_s22  ;;  %s136_s27 = scalar_lea.vmem (%p29_p4), [#allocation2], %s479_s23 }
  0x12   : > { %v152_v0 = vld [vmem:[%s609_s26] sm:$0xff] (%p29_p4)  ;;  %v154_v1 = vld [vmem:[%s609_s26 + $0x8] sm:$0xff] (%p29_p4) }
  0x13   : > { %v156_v2 = vld [vmem:[%s609_s26 + $0x40] sm:$0xff] (%p29_p4)  ;;  %153 = vst [vmem:[%s136_s27] sm:$0xff] (%p29_p4), %v152_v0  ;;  %v158_v3 = vld [vmem:[%s609_s26 + $0x48] sm:$0xff] (%p29_p4) }
  0x14   : > { %155 = vst [vmem:[%s136_s27 + $0x8] sm:$0xff] %v154_v1  ;;  %v160_v4 = vld [vmem:[%s609_s26 + $0x80] sm:$0xff]  ;;  %v162_v5 = vld [vmem:[%s609_s26 + $0x88] sm:$0xff] }
  0x15   : > { %157 = vst [vmem:[%s136_s27 + $0x10] sm:$0xff] %v156_v2  ;;  %v164_v6 = vld [vmem:[%s609_s26 + $0xc0] sm:$0xff]  ;;  %v166_v7 = vld [vmem:[%s609_s26 + $0xc8] sm:$0xff] }
  0x16   : > { %159 = vst [vmem:[%s136_s27 + $0x18] sm:$0xff] %v158_v3  ;;  %v168_v8 = vld [vmem:[%s609_s26 + $0x100] sm:$0xff]  ;;  %v170_v9 = vld [vmem:[%s609_s26 + $0x108] sm:$0xff] }
  0x17   : > { %161 = vst [vmem:[%s136_s27 + $0x20] sm:$0xff] %v160_v4  ;;  %v172_v10 = vld [vmem:[%s609_s26 + $0x140] sm:$0xff]  ;;  %v174_v11 = vld [vmem:[%s609_s26 + $0x148] sm:$0xff] }
  0x18   : > { %163 = vst [vmem:[%s136_s27 + $0x28] sm:$0xff] %v162_v5  ;;  %v176_v12 = vld [vmem:[%s609_s26 + $0x180] sm:$0xff]  ;;  %v178_v13 = vld [vmem:[%s609_s26 + $0x188] sm:$0xff] }
  0x19   : > { %165 = vst [vmem:[%s136_s27 + $0x30] sm:$0xff] %v164_v6  ;;  %v180_v14 = vld [vmem:[%s609_s26 + $0x1c0] sm:$0xff]  ;;  %v182_v15 = vld [vmem:[%s609_s26 + $0x1c8] sm:$0xff] }
  0x1a   : > { %167 = vst [vmem:[%s136_s27 + $0x38] sm:$0xff] %v166_v7 }
  0x1b   : > { %169 = vst [vmem:[%s136_s27 + $0x40] sm:$0xff] %v168_v8 }
  0x1c   : > { %171 = vst [vmem:[%s136_s27 + $0x48] sm:$0xff] %v170_v9 }
  0x1d   : > { %173 = vst [vmem:[%s136_s27 + $0x50] sm:$0xff] %v172_v10 }
  0x1e   : > { %175 = vst [vmem:[%s136_s27 + $0x58] sm:$0xff] %v174_v11 }
  0x1f   : > { %177 = vst [vmem:[%s136_s27 + $0x60] sm:$0xff] %v176_v12 }
  0x20   : > { %179 = vst [vmem:[%s136_s27 + $0x68] sm:$0xff] %v178_v13 }
  0x21   : > { %181 = vst [vmem:[%s136_s27 + $0x70] sm:$0xff] %v180_v14 }
  0x22   : > { %183 = vst [vmem:[%s136_s27 + $0x78] sm:$0xff] %v182_v15 }
  0x23 PF: > { %p482_p7 = scmp.ge.s32.totalorder %s545_s14, 1  ;;  %p196_p8 = scmp.lt.s32.totalorder %s545_s14, 5 }
  0x25   : > { %p197_p9 = pnand %p482_p7, %p196_p8 }
  0x26   : > { %p230_p10 = scmp.lt.s32.totalorder (!%p197_p9), %s584_s15, 3  ;;  %s203_s4 = sand.u32 (!%p197_p9), 1, %s537_s12  }
  0x27   : > { %200 = sbr.rel (%p197_p9) target bundleno = 192 (0xc0), region = 51  ;;  %s483_s5 = sshll.u32 (!%p197_p9), %s203_s4, 7 }
  0x28   : > { %s638_s10 = scalar_lea.vmem (!%p197_p9), [#allocation2], %s483_s5  ;;  %s644_s11 = scalar_lea.vmem (!%p197_p9), [#allocation3], %s483_s5 }
  0x2c   : > { %v269_v16 = vld [vmem:[%s708_s2] sm:$0xff]  ;;  %v547_v17 = vmov 0   ;;  %s231_s30 = scalar_select %p230_p10, %s584_s15, 3  ;;  %v244_v34 = vld [vmem:[%s638_s10 + $0x48] sm:$0xff]  ;;  %v245_v42 = vld [vmem:[%s638_s10 + $0x50] sm:$0xff] }
  0x2d   : > { %520 = vset.pattern.permute.xlu0 %v547_v17  ;;  %v278_v18 = vperm.slane %v269_v16, 0  ;;  %521 = vset.pattern.permute.xlu1 %v547_v17  ;;  %v272_v19 = vrot.slane %v269_v16, 2  ;;  %v274_v20 = vrot.slane %v269_v16, 4  ;;  %v271_v22 = vrot.slane %v269_v16, 1  ;;  %v243_v33 = vld [vmem:[%s638_s10 + $0x40] sm:$0xff]  ;;  %v246_v43 = vld [vmem:[%s638_s10 + $0x58] sm:$0xff] }
  0x2e   : > { %522 = vset.pattern.permute.xlu2 %v547_v17  ;;  %v273_v24 = vrot.slane %v269_v16, 3  ;;  %v275_v25 = vrot.slane %v269_v16, 5  ;;  %v276_v29 = vrot.slane %v269_v16, 6  ;;  %v277_v30 = vrot.slane %v269_v16, 7  ;;  %s493_s6 = sshll.u32 %s231_s30, 4  ;;  %v235_v49 = vld [vmem:[%s638_s10] sm:$0xff] }
  0x2f   : > { %287 = vperm.xlu0 %520, %v278_v18   ;;  %v280_v21 = vperm.slane %v272_v19, 0  ;;  %v282_v23 = vperm.slane %v274_v20, 0  ;;  %v279_v26 = vperm.slane %v271_v22, 0  ;;  %s234_s9 = scalar_lea.vmem %s707_s1, %s493_s6  ;;  %v236_v50 = vld [vmem:[%s638_s10 + $0x8] sm:$0xff]  ;;  %v239_v51 = vld [vmem:[%s638_s10 + $0x20] sm:$0xff]  ;;  %v237_v61 = vld [vmem:[%s638_s10 + $0x10] sm:$0xff] }
  0x30   : > { %v281_v27 = vperm.slane %v273_v24, 0  ;;  %v283_v28 = vperm.slane %v275_v25, 0  ;;  %v284_v31 = vperm.slane %v276_v29, 0  ;;  %v285_v32 = vperm.slane %v277_v30, 0  ;;  %v251_v35 = vld [vmem:[%s234_s9] sm:$0xff]  ;;  %v252_v36 = vld [vmem:[%s234_s9 + $0x8] sm:$0xff] }
  0x31   : > { %295 = vperm.xlu1 %521, %v280_v21   ;;  %303 = vperm.xlu2 %522, %v282_v23   ;;  %v261_v37 = vmul.f32 %v251_v35, %v243_v33  ;;  %v262_v38 = vmul.f32 %v252_v36, %v244_v34  ;;  %v263_v44 = vmul.f32 %v251_v35, %v245_v42  ;;  %v240_v52 = vld [vmem:[%s638_s10 + $0x28] sm:$0xff]  ;;  %v238_v62 = vld [vmem:[%s638_s10 + $0x18] sm:$0xff]  ;;  %v241_v1 = vld [vmem:[%s638_s10 + $0x30] sm:$0xff]  ;;  %s494_s12 = sshll.u32 (%p599_p5), %s584_s15, 4 }
  0x32   : > { %v264_v45 = vmul.f32 %v252_v36, %v246_v43  ;;  %v253_v53 = vmul.f32 %v251_v35, %v235_v49  ;;  %v254_v54 = vmul.f32 %v252_v36, %v236_v50  ;;  %v257_v55 = vmul.f32 %v251_v35, %v239_v51  ;;  %v242_v2 = vld [vmem:[%s638_s10 + $0x38] sm:$0xff]  ;;  %v247_v11 = vld [vmem:[%s638_s10 + $0x60] sm:$0xff]  ;;  %v248_v12 = vld [vmem:[%s638_s10 + $0x68] sm:$0xff]  ;;  %s359_s18 = scalar_lea.vmem (%p599_p5), %s709_s3, %s494_s12 }
  0x33   : > { %v258_v56 = vmul.f32 %v252_v36, %v240_v52  ;;  %v255_v3 = vmul.f32 %v251_v35, %v237_v61  ;;  %v256_v4 = vmul.f32 %v252_v36, %v238_v62  ;;  %v259_v5 = vmul.f32 %v251_v35, %v241_v1  ;;  %v249_v15 = vld [vmem:[%s638_s10 + $0x70] sm:$0xff]  ;;  %v250_v16 = vld [vmem:[%s638_s10 + $0x78] sm:$0xff] }
  0x34   : > { %v260_v6 = vmul.f32 %v252_v36, %v242_v2  ;;  %v265_v17 = vmul.f32 %v251_v35, %v247_v11  ;;  %v266_v18 = vmul.f32 %v252_v36, %v248_v12  ;;  %v267_v19 = vmul.f32 %v251_v35, %v249_v15 }
  0x35   : > { %v268_v20 = vmul.f32 %v252_v36, %v250_v16 }
  0x37   : > { %291 = vperm.xlu0 %520, %v279_v26  }
  0x39   : > { %299 = vperm.xlu1 %521, %v281_v27   ;;  %307 = vperm.xlu2 %522, %v283_v28  }
  0x3f   : > { %311 = vperm.xlu0 %520, %v284_v31  }
  0x41   : > { %315 = vperm.xlu1 %521, %v285_v32  }
  0x8b   : > { %v304_v39 = vpop.permute.xlu2 %303 }
  0x8c   : > { %v326_v40 = vmul.f32 %v304_v39, %v261_v37  ;;  %v327_v41 = vmul.f32 %v304_v39, %v262_v38 }
  0x8e   : > { %342 = vst [vmem:[%s644_s11 + $0x40] sm:$0xff] %v326_v40 }
  0x8f   : > { %343 = vst [vmem:[%s644_s11 + $0x48] sm:$0xff] %v327_v41 }
  0x93   : > { %v308_v46 = vpop.permute.xlu2 %307 }
  0x94   : > { %v328_v47 = vmul.f32 %v308_v46, %v263_v44  ;;  %v329_v48 = vmul.f32 %v308_v46, %v264_v45 }
  0x95   : > { %v388_v35 = vld [vmem:[%s644_s11 + $0x40] sm:$0xff] (%p599_p5) }
  0x96   : > { %344 = vst [vmem:[%s644_s11 + $0x50] sm:$0xff] %v328_v47  ;;  %v390_v36 = vld [vmem:[%s644_s11 + $0x48] sm:$0xff] (%p599_p5) }
  0x97   : > { %345 = vst [vmem:[%s644_s11 + $0x58] sm:$0xff] %v329_v48 }
  0x98   : > { %389 = vst [vmem:[%s359_s18 + $0x100] sm:$0xff] (%p599_p5), %v388_v35 }
  0x99   : > { %391 = vst [vmem:[%s359_s18 + $0x108] sm:$0xff] (%p599_p5), %v390_v36 }
  0x9d   : > { %v392_v37 = vld [vmem:[%s644_s11 + $0x50] sm:$0xff] (%p599_p5) }
  0x9e   : > { %v394_v38 = vld [vmem:[%s644_s11 + $0x58] sm:$0xff] (%p599_p5)  ;;  %393 = vst [vmem:[%s359_s18 + $0x140] sm:$0xff] (%p599_p5), %v392_v37 }
  0x9f   : > { %395 = vst [vmem:[%s359_s18 + $0x148] sm:$0xff] (%p599_p5), %v394_v38 }
  0xa1   : > { %v288_v57 = vpop.permute.xlu0 %287 }
  0xa2   : > { %v318_v58 = vmul.f32 %v288_v57, %v253_v53  ;;  %v319_v59 = vmul.f32 %v288_v57, %v254_v54 }
  0xa3   : > { %v296_v60 = vpop.permute.xlu1 %295 }
  0xa4   : > { %334 = vst [vmem:[%s644_s11] sm:$0xff] %v318_v58  ;;  %v322_v63 = vmul.f32 %v296_v60, %v257_v55  ;;  %v323_v0 = vmul.f32 %v296_v60, %v258_v56 }
  0xa5   : > { %335 = vst [vmem:[%s644_s11 + $0x8] sm:$0xff] %v319_v59 }
  0xa6   : > { %338 = vst [vmem:[%s644_s11 + $0x20] sm:$0xff] %v322_v63 }
  0xa7   : > { %339 = vst [vmem:[%s644_s11 + $0x28] sm:$0xff] %v323_v0 }
  0xa9   : > { %v292_v7 = vpop.permute.xlu0 %291 }
  0xaa   : > { %v320_v8 = vmul.f32 %v292_v7, %v255_v3  ;;  %v321_v9 = vmul.f32 %v292_v7, %v256_v4 }
  0xab   : > { %v300_v10 = vpop.permute.xlu1 %299  ;;  %v372_v27 = vld [vmem:[%s644_s11] sm:$0xff] (%p599_p5) }
  0xac   : > { %336 = vst [vmem:[%s644_s11 + $0x10] sm:$0xff] %v320_v8  ;;  %v324_v13 = vmul.f32 %v300_v10, %v259_v5  ;;  %v325_v14 = vmul.f32 %v300_v10, %v260_v6  ;;  %v374_v28 = vld [vmem:[%s644_s11 + $0x8] sm:$0xff] (%p599_p5) }
  0xad   : > { %337 = vst [vmem:[%s644_s11 + $0x18] sm:$0xff] %v321_v9  ;;  %v380_v31 = vld [vmem:[%s644_s11 + $0x20] sm:$0xff] (%p599_p5) }
  0xae   : > { %340 = vst [vmem:[%s644_s11 + $0x30] sm:$0xff] %v324_v13  ;;  %v382_v32 = vld [vmem:[%s644_s11 + $0x28] sm:$0xff] (%p599_p5) }
  0xaf   : > { %341 = vst [vmem:[%s644_s11 + $0x38] sm:$0xff] %v325_v14 }
  0xb0   : > { %373 = vst [vmem:[%s359_s18] sm:$0xff] (%p599_p5), %v372_v27 }
  0xb1   : > { %v312_v21 = vpop.permute.xlu0 %311  ;;  %375 = vst [vmem:[%s359_s18 + $0x8] sm:$0xff] (%p599_p5), %v374_v28 }
  0xb2   : > { %v330_v22 = vmul.f32 %v312_v21, %v265_v17  ;;  %v331_v23 = vmul.f32 %v312_v21, %v266_v18  ;;  %381 = vst [vmem:[%s359_s18 + $0x80] sm:$0xff] (%p599_p5), %v380_v31 }
  0xb3   : > { %v316_v24 = vpop.permute.xlu1 %315  ;;  %356 = sbr.rel (!%p599_p5) target bundleno = 192 (0xc0), region = 59  ;;  %v376_v29 = vld [vmem:[%s644_s11 + $0x10] sm:$0xff] (%p599_p5)  ;;  %383 = vst [vmem:[%s359_s18 + $0x88] sm:$0xff] (%p599_p5), %v382_v32 }
  0xb4   : > { %346 = vst [vmem:[%s644_s11 + $0x60] sm:$0xff] %v330_v22  ;;  %v332_v25 = vmul.f32 %v316_v24, %v267_v19  ;;  %v333_v26 = vmul.f32 %v316_v24, %v268_v20  ;;  %v378_v30 = vld [vmem:[%s644_s11 + $0x18] sm:$0xff] (%p599_p5) }
  0xb5   : > { %347 = vst [vmem:[%s644_s11 + $0x68] sm:$0xff] %v331_v23  ;;  %v384_v33 = vld [vmem:[%s644_s11 + $0x30] sm:$0xff] (%p599_p5) }
  0xb6   : > { %348 = vst [vmem:[%s644_s11 + $0x70] sm:$0xff] %v332_v25  ;;  %v386_v34 = vld [vmem:[%s644_s11 + $0x38] sm:$0xff] (%p599_p5) }
  0xb7   : > { %349 = vst [vmem:[%s644_s11 + $0x78] sm:$0xff] %v333_v26 }
  0xb8   : > { %377 = vst [vmem:[%s359_s18 + $0x40] sm:$0xff] %v376_v29 }
  0xb9   : > { %379 = vst [vmem:[%s359_s18 + $0x48] sm:$0xff] %v378_v30 }
  0xba   : > { %385 = vst [vmem:[%s359_s18 + $0xc0] sm:$0xff] %v384_v33 }
  0xbb   : > { %387 = vst [vmem:[%s359_s18 + $0xc8] sm:$0xff] %v386_v34  ;;  %v396_v39 = vld [vmem:[%s644_s11 + $0x60] sm:$0xff] }
  0xbc   : > { %v398_v40 = vld [vmem:[%s644_s11 + $0x68] sm:$0xff]  ;;  %397 = vst [vmem:[%s359_s18 + $0x180] sm:$0xff] %v396_v39 }
  0xbd   : > { %v400_v41 = vld [vmem:[%s644_s11 + $0x70] sm:$0xff]  ;;  %399 = vst [vmem:[%s359_s18 + $0x188] sm:$0xff] %v398_v40 }
  0xbe   : > { %v402_v42 = vld [vmem:[%s644_s11 + $0x78] sm:$0xff]  ;;  %401 = vst [vmem:[%s359_s18 + $0x1c0] sm:$0xff] %v400_v41 }
  0xbf   : > { %403 = vst [vmem:[%s359_s18 + $0x1c8] sm:$0xff] %v402_v42 }
  0xc0 PF: > { %p10_p11 = scmp.ge.s32.totalorder %s587_s16, 6   ;;  %s711_s12 = smov %s541_s13 }
  0xc1   : > { %s712_s13 = smov %s597_s19  ;;  %s713_s14 = smov %s587_s16 }
  0xc2   :  { %12 = sbr.rel (!%p10_p11) target bundleno = 2 (0x2), region = 116 }

</bundles_post_ra>
